<compile_context>
chip_gen: v6e
topology: v6e:2x2x1
jax: 0.10.0
libtpu: 0.0.40
codegen_flags: <defaults>
</compile_context>

<pallas_src>
import functools

import jax
import jax.numpy as jnp
from jax.experimental import pallas as pl
from jax.experimental.pallas import tpu as pltpu

C_S = 384          # input channel dim (fixed by the module: LayerNorm(384))
C_HIDDEN = 128     # hidden dim of linear_1 / linear_2
NO_BINS = 50       # output bins of linear_3
NO_BINS_PAD = 128  # lane-dense padded output width
LN_EPS = 1e-5      # torch.nn.LayerNorm default eps
MAX_TM = 512       # row tile upper bound (keeps VMEM use ~2.5 MiB, well inside limits)


def _plddt_kernel(x_ref, w1_ref, b1_ref, w2_ref, b2_ref, w3_ref, b3_ref, o_ref):
    # x_ref: (TM, 384) tile of rows.
    x = x_ref[...].astype(jnp.float32)

    # --- LayerNorm statistics in f32 (affine already folded into W1/b1) ---
    mean = jnp.mean(x, axis=-1, keepdims=True)
    centered = x - mean
    var = jnp.mean(centered * centered, axis=-1, keepdims=True)
    xn = centered * jax.lax.rsqrt(var + LN_EPS)          # (TM, 384)

    # --- MLP: 384 -> 128 -> ReLU -> 128 -> ReLU -> 128(pad of 50) ---
    # bf16 operands, f32 accumulation (MXU-native path on all generations).
    h1 = jnp.dot(xn.astype(jnp.bfloat16), w1_ref[...],
                 preferred_element_type=jnp.float32) + b1_ref[...]
    h1 = jnp.maximum(h1, 0.0)
    h2 = jnp.dot(h1.astype(jnp.bfloat16), w2_ref[...],
                 preferred_element_type=jnp.float32) + b2_ref[...]
    h2 = jnp.maximum(h2, 0.0)
    out = jnp.dot(h2.astype(jnp.bfloat16), w3_ref[...],
                  preferred_element_type=jnp.float32) + b3_ref[...]

    o_ref[...] = out.astype(o_ref.dtype)


def _choose_tm(M, dtype):
    """Large row tile; keep >= 2 grid steps so both v7x TensorCores get work."""
    align = 16 if jnp.dtype(dtype).itemsize < 4 else 8   # bf16 sublane packing
    if M >= 2 * MAX_TM:
        return MAX_TM
    half = (M + 1) // 2
    tm = -(-half // align) * align
    return max(tm, align)


@functools.partial(jax.jit, static_argnames=("tm",))
def _plddt_head_call(x, w1, b1, w2, b2, w3, b3, *, tm):
    """x: (M, 384) -> (M, NO_BINS)."""
    M = x.shape[0]
    M_pad = pl.cdiv(M, tm) * tm
    if M_pad != M:
        x = jnp.pad(x, ((0, M_pad - M), (0, 0)))

    full = lambda shape: pl.BlockSpec(shape, lambda i: (0, 0))

    out = pl.pallas_call(
        _plddt_kernel,
        out_shape=jax.ShapeDtypeStruct((M_pad, NO_BINS_PAD), x.dtype),
        grid_spec=pltpu.PrefetchScalarGridSpec(
            num_scalar_prefetch=0,
            grid=(M_pad // tm,),
            in_specs=[
                pl.BlockSpec((tm, C_S), lambda i: (i, 0)),   # x rows
                full((C_S, C_HIDDEN)),                       # W1 (LN-folded, bf16)
                full((1, C_HIDDEN)),                         # b1 (LN-folded, f32)
                full((C_HIDDEN, C_HIDDEN)),                  # W2 (bf16)
                full((1, C_HIDDEN)),                         # b2 (f32)
                full((C_HIDDEN, NO_BINS_PAD)),               # W3 (padded, bf16)
                full((1, NO_BINS_PAD)),                      # b3 (padded, f32)
            ],
            out_specs=pl.BlockSpec((tm, NO_BINS_PAD), lambda i: (i, 0)),
        ),
        compiler_params=pltpu.CompilerParams(
            dimension_semantics=("parallel",)),
    )(x, w1, b1, w2, b2, w3, b3)

    return out[:M, :NO_BINS]


def plddt_head(s, prepared_params, *, tm=None):
    """s: (B, i, 384) -> (B, i, 50). `prepared_params` comes from prepare_params()."""
    B, N, C = s.shape
    assert C == C_S
    M = B * N
    if tm is None:
        tm = _choose_tm(M, s.dtype)
    out = _plddt_head_call(s.reshape(M, C), *prepared_params, tm=tm)
    return out.reshape(B, N, NO_BINS)


def prepare_params(params, dot_dtype=jnp.bfloat16):
    """One-time param prep (outside the per-call path):
       * fold LayerNorm affine into linear_1:  W1' = diag(gamma) @ W1,
         b1' = beta @ W1 + b1
       * pad linear_3 to 128 output columns (lane-dense stores)
       * cast matmul weights to bf16, keep biases f32, reshape biases to (1, K)
    """
    ln_w, ln_b, w1, b1, w2, b2, w3, b3 = [p.astype(jnp.float32) for p in params]

    w1f = ln_w[:, None] * w1                 # (384, 128)
    b1f = ln_b @ w1 + b1                     # (128,)

    w3p = jnp.zeros((C_HIDDEN, NO_BINS_PAD), jnp.float32).at[:, :NO_BINS].set(w3)
    b3p = jnp.zeros((NO_BINS_PAD,), jnp.float32).at[:NO_BINS].set(b3)

    return (
        w1f.astype(dot_dtype),
        b1f.reshape(1, C_HIDDEN),
        w2.astype(dot_dtype),
        b2.reshape(1, C_HIDDEN),
        w3p.astype(dot_dtype),
        b3p.reshape(1, NO_BINS_PAD),
    )


def init_params(key, dtype=jnp.float32):
    """Deterministic synthetic parameters matching the module's shapes.

    Linear weights are stored as (in_features, out_features), i.e. already
    transposed relative to torch's (out, in) convention, so the math is
    x @ W + b. LayerNorm gamma/beta are non-trivial to exercise the fold.
    """
    k0, k1, k2, k3, k4, k5, k6, k7 = jax.random.split(key, 8)
    ln_w = (1.0 + 0.1 * jax.random.normal(k0, (C_S,), dtype))
    ln_b = (0.1 * jax.random.normal(k7, (C_S,), dtype))
    w1 = jax.random.normal(k1, (C_S, C_HIDDEN), dtype) * 0.02
    b1 = jax.random.normal(k2, (C_HIDDEN,), dtype) * 0.02
    w2 = jax.random.normal(k3, (C_HIDDEN, C_HIDDEN), dtype) * 0.02
    b2 = jax.random.normal(k4, (C_HIDDEN,), dtype) * 0.02
    w3 = jax.random.normal(k5, (C_HIDDEN, NO_BINS), dtype) * 0.02
    b3 = jax.random.normal(k6, (NO_BINS,), dtype) * 0.02
    return (ln_w, ln_b, w1, b1, w2, b2, w3, b3)


def plddt_head_ref(s, params):
    """Pure-JAX f32 reference (un-folded, un-padded) for correctness checking."""
    (ln_w, ln_b, w1, b1, w2, b2, w3, b3) = params
    x = s.astype(jnp.float32)
    mean = jnp.mean(x, axis=-1, keepdims=True)
    var = jnp.mean((x - mean) ** 2, axis=-1, keepdims=True)
    xn = (x - mean) * jax.lax.rsqrt(var + LN_EPS) * ln_w + ln_b
    h1 = jnp.maximum(xn @ w1 + b1, 0.0)
    h2 = jnp.maximum(h1 @ w2 + b2, 0.0)
    return (h2 @ w3 + b3).astype(s.dtype)


if __name__ == "__main__":
    key = jax.random.PRNGKey(0)
    k_in, k_par = jax.random.split(key)

    B, N = 2, 8                      # batch=2, seq=8; channel dim fixed at 384
    s = jax.random.normal(k_in, (B, N, C_S), jnp.float32)
    params = init_params(k_par)
    prepared = prepare_params(params)

    out = plddt_head(s, prepared)
    out = jax.block_until_ready(out)
    assert out.shape == (B, N, NO_BINS), out.shape

    ref = plddt_head_ref(s, params)
    err = float(jnp.max(jnp.abs(out - ref)))
    # bf16 matmul operands (f32 accumulate) vs pure-f32 reference.
    assert err < 2e-2, f"max abs err {err}"

    print("KERNEL_OK")
</pallas_src>

<mosaic_0001>
module attributes {stable_mosaic.version = 11 : i64} {
  func.func @_plddt_kernel(%arg0: i32, %arg1: memref<8x384xf32, #tpu.memory_space<vmem>>, %arg2: memref<384x128xbf16, #tpu.memory_space<vmem>>, %arg3: memref<1x128xf32, #tpu.memory_space<vmem>>, %arg4: memref<128x128xbf16, #tpu.memory_space<vmem>>, %arg5: memref<1x128xf32, #tpu.memory_space<vmem>>, %arg6: memref<128x128xbf16, #tpu.memory_space<vmem>>, %arg7: memref<1x128xf32, #tpu.memory_space<vmem>>, %arg8: memref<8x128xf32, #tpu.memory_space<vmem>>) attributes {dimension_semantics = [#tpu.dimension_semantics<parallel>], iteration_bounds = array<i64: 2>, scalar_prefetch = 0 : i64, scratch_operands = 0 : i64, tpu.core_type = #tpu.core_type<tc>, window_params = [{transform_indices = @transform_0, window_bounds = array<i64: 8, 384>}, {pipeline_mode = #tpu.pipeline_mode<synchronous>, transform_indices = @transform_1, window_bounds = array<i64: 384, 128>}, {pipeline_mode = #tpu.pipeline_mode<synchronous>, transform_indices = @transform_2, window_bounds = array<i64: 1, 128>}, {pipeline_mode = #tpu.pipeline_mode<synchronous>, transform_indices = @transform_3, window_bounds = array<i64: 128, 128>}, {pipeline_mode = #tpu.pipeline_mode<synchronous>, transform_indices = @transform_4, window_bounds = array<i64: 1, 128>}, {pipeline_mode = #tpu.pipeline_mode<synchronous>, transform_indices = @transform_5, window_bounds = array<i64: 128, 128>}, {pipeline_mode = #tpu.pipeline_mode<synchronous>, transform_indices = @transform_6, window_bounds = array<i64: 1, 128>}, {transform_indices = @transform_7, window_bounds = array<i64: 8, 128>}]} {
    %c0 = arith.constant 0 : index
    %c0_0 = arith.constant 0 : index
    %0 = vector.load %arg1[%c0, %c0_0] : memref<8x384xf32, #tpu.memory_space<vmem>>, vector<8x384xf32>
    %cst = arith.constant dense<0.000000e+00> : vector<8xf32>
    %1 = vector.multi_reduction <add>, %0, %cst [1] : vector<8x384xf32> to vector<8xf32>
    %2 = vector.shape_cast %1 : vector<8xf32> to vector<8x1xf32>
    %cst_1 = arith.constant 3.840000e+02 : f32
    %3 = vector.broadcast %cst_1 : f32 to vector<8x1xf32>
    %4 = arith.divf %2, %3 : vector<8x1xf32>
    %5 = vector.broadcast %4 : vector<8x1xf32> to vector<8x384xf32>
    %6 = arith.subf %0, %5 : vector<8x384xf32>
    %7 = arith.mulf %6, %6 : vector<8x384xf32>
    %cst_2 = arith.constant dense<0.000000e+00> : vector<8xf32>
    %8 = vector.multi_reduction <add>, %7, %cst_2 [1] : vector<8x384xf32> to vector<8xf32>
    %9 = vector.shape_cast %8 : vector<8xf32> to vector<8x1xf32>
    %cst_3 = arith.constant 3.840000e+02 : f32
    %10 = vector.broadcast %cst_3 : f32 to vector<8x1xf32>
    %11 = arith.divf %9, %10 : vector<8x1xf32>
    %cst_4 = arith.constant 9.99999974E-6 : f32
    %12 = vector.broadcast %cst_4 : f32 to vector<8x1xf32>
    %13 = arith.addf %11, %12 : vector<8x1xf32>
    %14 = math.rsqrt %13 : vector<8x1xf32>
    %15 = vector.broadcast %14 : vector<8x1xf32> to vector<8x384xf32>
    %16 = arith.mulf %6, %15 : vector<8x384xf32>
    %17 = arith.truncf %16 : vector<8x384xf32> to vector<8x384xbf16>
    %c0_5 = arith.constant 0 : index
    %c0_6 = arith.constant 0 : index
    %18 = vector.load %arg2[%c0_5, %c0_6] : memref<384x128xbf16, #tpu.memory_space<vmem>>, vector<384x128xbf16>
    %cst_7 = arith.constant dense<0.000000e+00> : vector<8x128xf32>
    %19 = tpu.matmul %17, %18, %cst_7 {dimension_numbers = #tpu.dot_dimension_numbers<[1], [0], [0], [1], [0, 0, 1, 1], [], []>} : vector<8x384xbf16>, vector<384x128xbf16>, vector<8x128xf32> -> vector<8x128xf32>
    %c0_8 = arith.constant 0 : index
    %c0_9 = arith.constant 0 : index
    %20 = vector.load %arg3[%c0_8, %c0_9] : memref<1x128xf32, #tpu.memory_space<vmem>>, vector<1x128xf32>
    %21 = vector.broadcast %20 : vector<1x128xf32> to vector<8x128xf32>
    %22 = arith.addf %19, %21 : vector<8x128xf32>
    %cst_10 = arith.constant 0.000000e+00 : f32
    %23 = vector.broadcast %cst_10 : f32 to vector<8x128xf32>
    %24 = arith.maximumf %22, %23 : vector<8x128xf32>
    %25 = arith.truncf %24 : vector<8x128xf32> to vector<8x128xbf16>
    %c0_11 = arith.constant 0 : index
    %c0_12 = arith.constant 0 : index
    %26 = vector.load %arg4[%c0_11, %c0_12] : memref<128x128xbf16, #tpu.memory_space<vmem>>, vector<128x128xbf16>
    %cst_13 = arith.constant dense<0.000000e+00> : vector<8x128xf32>
    %27 = tpu.matmul %25, %26, %cst_13 {dimension_numbers = #tpu.dot_dimension_numbers<[1], [0], [0], [1], [0, 0, 1, 1], [], []>} : vector<8x128xbf16>, vector<128x128xbf16>, vector<8x128xf32> -> vector<8x128xf32>
    %c0_14 = arith.constant 0 : index
    %c0_15 = arith.constant 0 : index
    %28 = vector.load %arg5[%c0_14, %c0_15] : memref<1x128xf32, #tpu.memory_space<vmem>>, vector<1x128xf32>
    %29 = vector.broadcast %28 : vector<1x128xf32> to vector<8x128xf32>
    %30 = arith.addf %27, %29 : vector<8x128xf32>
    %cst_16 = arith.constant 0.000000e+00 : f32
    %31 = vector.broadcast %cst_16 : f32 to vector<8x128xf32>
    %32 = arith.maximumf %30, %31 : vector<8x128xf32>
    %33 = arith.truncf %32 : vector<8x128xf32> to vector<8x128xbf16>
    %c0_17 = arith.constant 0 : index
    %c0_18 = arith.constant 0 : index
    %34 = vector.load %arg6[%c0_17, %c0_18] : memref<128x128xbf16, #tpu.memory_space<vmem>>, vector<128x128xbf16>
    %cst_19 = arith.constant dense<0.000000e+00> : vector<8x128xf32>
    %35 = tpu.matmul %33, %34, %cst_19 {dimension_numbers = #tpu.dot_dimension_numbers<[1], [0], [0], [1], [0, 0, 1, 1], [], []>} : vector<8x128xbf16>, vector<128x128xbf16>, vector<8x128xf32> -> vector<8x128xf32>
    %c0_20 = arith.constant 0 : index
    %c0_21 = arith.constant 0 : index
    %36 = vector.load %arg7[%c0_20, %c0_21] : memref<1x128xf32, #tpu.memory_space<vmem>>, vector<1x128xf32>
    %37 = vector.broadcast %36 : vector<1x128xf32> to vector<8x128xf32>
    %38 = arith.addf %35, %37 : vector<8x128xf32>
    %c0_22 = arith.constant 0 : index
    %c0_23 = arith.constant 0 : index
    %39 = vector.load %arg8[%c0_22, %c0_23] : memref<8x128xf32, #tpu.memory_space<vmem>>, vector<8x128xf32>
    tpu.vector_store %arg8[%c0_22, %c0_23], %38 {strides = array<i32>} : memref<8x128xf32, #tpu.memory_space<vmem>>, vector<8x128xf32>,
    return
  }
  func.func @transform_0(%arg0: i32) -> (i32, i32) {
    %c0_i32 = arith.constant 0 : i32
    %c0_i32_0 = arith.constant 0 : i32
    return %arg0, %c0_i32 : i32, i32
  }
  func.func @transform_1(%arg0: i32) -> (i32, i32) {
    %c0_i32 = arith.constant 0 : i32
    %c0_i32_0 = arith.constant 0 : i32
    %c0_i32_1 = arith.constant 0 : i32
    return %c0_i32, %c0_i32_0 : i32, i32
  }
  func.func @transform_2(%arg0: i32) -> (i32, i32) {
    %c0_i32 = arith.constant 0 : i32
    %c0_i32_0 = arith.constant 0 : i32
    %c0_i32_1 = arith.constant 0 : i32
    return %c0_i32, %c0_i32_0 : i32, i32
  }
  func.func @transform_3(%arg0: i32) -> (i32, i32) {
    %c0_i32 = arith.constant 0 : i32
    %c0_i32_0 = arith.constant 0 : i32
    %c0_i32_1 = arith.constant 0 : i32
    return %c0_i32, %c0_i32_0 : i32, i32
  }
  func.func @transform_4(%arg0: i32) -> (i32, i32) {
    %c0_i32 = arith.constant 0 : i32
    %c0_i32_0 = arith.constant 0 : i32
    %c0_i32_1 = arith.constant 0 : i32
    return %c0_i32, %c0_i32_0 : i32, i32
  }
  func.func @transform_5(%arg0: i32) -> (i32, i32) {
    %c0_i32 = arith.constant 0 : i32
    %c0_i32_0 = arith.constant 0 : i32
    %c0_i32_1 = arith.constant 0 : i32
    return %c0_i32, %c0_i32_0 : i32, i32
  }
  func.func @transform_6(%arg0: i32) -> (i32, i32) {
    %c0_i32 = arith.constant 0 : i32
    %c0_i32_0 = arith.constant 0 : i32
    %c0_i32_1 = arith.constant 0 : i32
    return %c0_i32, %c0_i32_0 : i32, i32
  }
  func.func @transform_7(%arg0: i32) -> (i32, i32) {
    %c0_i32 = arith.constant 0 : i32
    %c0_i32_0 = arith.constant 0 : i32
    return %arg0, %c0_i32 : i32, i32
  }
}

</mosaic_0001>

<bundles_post_ra>
// kernel: _plddt_head_call.1
= control target key start
LH: loop header
LB: loop body
LE: loop exit
PB: predicated region body
PF: predicated region fallthrough
CT: control target
= control target key end

     0   :  { %s1739_s0 = inlined_call_operand.hbm [shape: f32[16,384], index: 0, kind: input, shape index: {}]   ;;  %s1740_s1 = inlined_call_operand.hbm [shape: bf16[384,128], index: 1, kind: input, shape index: {}]   ;;  %s1741_s2 = inlined_call_operand.vmem [shape: f32[1,128], index: 2, kind: input, shape index: {}]   ;;  %s1742_s3 = inlined_call_operand.hbm [shape: bf16[128,128], index: 3, kind: input, shape index: {}]   ;;  %s1743_s4 = inlined_call_operand.vmem [shape: f32[1,128], index: 4, kind: input, shape index: {}]   ;;  %s1744_s5 = inlined_call_operand.hbm [shape: bf16[128,128], index: 5, kind: input, shape index: {}]   ;;  %s1745_s6 = inlined_call_operand.vmem [shape: f32[1,128], index: 6, kind: input, shape index: {}]   ;;  %s1746_s7 = inlined_call_operand.hbm [shape: f32[16,128], index: 7, kind: output, shape index: {}]  }
   0x1   :  { %1751 = sst [smem:[#allocation15_spill]] %s1740_s1 }
   0x2   :  { %1752 = sst [smem:[#allocation16_spill]] %s1742_s3 }
   0x3   :  { %12 = vsyncpa [#allocation3], 0 }
   0x4   :  { %14 = vsyncpa [#allocation3 + $0x1], 0 }
   0x5   :  { %15 = vsyncpa [#allocation6], 0 }
   0x6   :  { %16 = vsyncpa [#allocation9], 0 }
   0x7   :  { %17 = vsyncpa [#allocation4], 0 }
   0x8   :  { %19 = vsyncpa [#allocation4 + $0x1], 0  ;;  %s1510_s24 = smov 0   ;;  %s1512_s25 = smov 0  }
   0x9   :  { %s1514_s26 = smov 0   ;;  %s1516_s27 = smov 0  }
   0xa LB: > { %s1531_s28 = sadd.s32 4294967295, %s1459_s27   ;;  %s987_s29 = sadd.s32 4294967294, %s1459_s27   ;;  %s1459_s27 = sphi %s1516_s27, %s1774_s27   ;;  %s1455_s26 = sphi %s1514_s26, %s1773_s26   ;;  %s1451_s25 = sphi %s1512_s25, %s1772_s25   ;;  %s1447_s24 = sphi %s1510_s24, %s1771_s24  }
   0xb   : > { %p45_p0 = scmp.ne.s32.totalorder %s1451_s25, %s1447_s24  ;;  %p1747_p1 = scmp.eq.s32.totalorder %s1531_s28, 0 }
   0xc   : > { %p201_p3 = scmp.eq.s32.totalorder %s987_s29, 1  ;;  %p988_p5 = scmp.ge.s32.totalorder %s1459_s27, 1 }
   0xd   : > { %p1540_p4 = por %p1747_p1, %p45_p0  ;;  %p208_p7 = scmp.lt.s32.totalorder %s1459_s27, 3 }
   0xe   : > { %p1545_p6 = por %p201_p3, %p45_p0  ;;  %s1461_s10 = smov [#allocation5]  }
   0xf   : > { %s1753_s30 = scalar_select %p1540_p4, 1, 0 }
  0x10   : > { %s1754_s8 = scalar_select %p1545_p6, 1, 0 }
  0x11   : > { %p1550_p8 = pnand %p988_p5, %p208_p7  ;;  %s220_s11 = sshll.u32 %s1461_s10, 4  ;;  %s221_s11 = int_to_ptr.vmem [resolvable:$true] %s220_s11 }
  0x12   : > { %s1462_s13 = smov [#allocation7]   ;;  %s1463_s15 = smov [#allocation8]  }
  0x13   : > { %s1755_s9 = scalar_select %p1550_p8, 1, 0 }
  0x14   : > { %p1174_p9 = pneg %p1550_p8  ;;  %s236_s14 = sshll.u32 %s1462_s13, 4  ;;  %s237_s14 = int_to_ptr.vmem [resolvable:$true] %s236_s14 }
  0x15   : > { %s252_s16 = sshll.u32 %s1463_s15, 4  ;;  %s1292_s17 = scalar_lea.vmem %s221_s11, 3072  ;;  %s253_s16 = int_to_ptr.vmem [resolvable:$true] %s252_s16 }
  0x16   : > { %p1559_p11 = pnand %p1174_p9, %p1747_p1  ;;  %p1293_p13 = scmp.ne.s32.totalorder %s221_s11, %s1292_s17 }
  0x17   : > { %p1300_p5 = scmp.lt.s32.totalorder %s221_s11, %s221_s11  ;;  %p1301_p7 = scmp.lt.s32.totalorder %s1292_s17, %s1292_s17 }
  0x18   : > { %p1283_p12 = pneg %p1559_p11 }
  0x19   : > { %p1302_p9 = por %p1301_p7, %p1300_p5 }
  0x1a   : > { %p1295_p0 = pnand %p1293_p13, %p1283_p12 }
  0x1c   : > { %p1296_p3 = pneg %p1295_p0 }
  0x1e   : > { %p1303_p10 = pnand %p1302_p9, %p1296_p3 }
  0x20   : > { %1306 = shalt.err (!%p1303_p10)
}
  0x21   : > { %s1464_s18 = smov 64   ;;  %s1465_s19 = smov 4  }
  0x22   : > { %s1757_s1 = sld [smem:[#allocation15_spill]]  ;;  %s1318_s22 = scalar_lea.vmem %s237_s14, 1024 }
  0x23   : > { %p1319_p1 = scmp.ne.s32.totalorder %s237_s14, %s1318_s22  ;;  %p1326_p2 = scmp.lt.s32.totalorder %s237_s14, %s237_s14 }
  0x24   : > { %p1327_p6 = scmp.lt.s32.totalorder %s1318_s22, %s1318_s22 }
  0x25   : > { %p1321_p13 = pnand %p1319_p1, %p1283_p12 }
  0x26   : > { %p1328_p5 = por %p1327_p6, %p1326_p2 }
  0x27   : > { %p1322_p0 = pneg %p1321_p13 }
  0x28   : > { %1177 = dma.hbm_to_vmem [thread:$0]  (!%p1559_p11), %s1757_s1, 3072, %s221_s11, [#allocation6], %s1464_s18, %s1464_s18, %s1465_s19  }
  0x29   : > { %p1329_p3 = pnand %p1328_p5, %p1322_p0 }
  0x2b   : > { %1332 = shalt.err (!%p1329_p3)
}
  0x2c   : > { %s1758_s3 = sld [smem:[#allocation16_spill]]  ;;  %s1344_s10 = scalar_lea.vmem %s253_s16, 1024 }
  0x2d   : > { %p1345_p10 = scmp.ne.s32.totalorder %s253_s16, %s1344_s10  ;;  %p1352_p9 = scmp.lt.s32.totalorder %s253_s16, %s253_s16 }
  0x2e   : > { %p1353_p13 = scmp.lt.s32.totalorder %s1344_s10, %s1344_s10 }
  0x2f   : > { %p1347_p7 = pnand %p1345_p10, %p1283_p12 }
  0x30   : > { %p1354_p4 = por %p1353_p13, %p1352_p9 }
  0x31   : > { %p1348_p1 = pneg %p1347_p7 }
  0x32   : > { %1180 = dma.hbm_to_vmem [thread:$0]  (!%p1559_p11), %s1758_s3, 1024, %s237_s14, [#allocation6], %s1464_s18, %s1464_s18, %s1465_s19  }
  0x33   : > { %p1355_p2 = pnand %p1354_p4, %p1348_p1 }
  0x35   : > { %1358 = shalt.err (!%p1355_p2)
}
  0x36   : > { %1183 = dma.hbm_to_vmem [thread:$0]  (!%p1559_p11), %s1744_s5, 1024, %s253_s16, [#allocation9], %s1464_s18, %s1464_s18, %s1465_s19  }
  0x37   : > { %s1590_s14 = sadd.s32 1, %s1459_s27   ;;  %s32_s12 = sadd.s32 1, %s1455_s26 }
  0x38   : > { %s29_s15 = ssub.s32 %s1459_s27, %s1590_s14  ;;  %p39_p6 = scmp.ne.s32.totalorder %s1455_s26, %s1451_s25 }
  0x39   : > { %p30_p4 = scmp.eq.s32.totalorder %s29_s15, 0  ;;  %p40_p12 = scmp.eq.s32.totalorder %s1459_s27, 0 }
  0x3a   : > { %p1195_p0 = scmp.lt.s32.totalorder %s1459_s27, 2  ;;  %p1759_p3 = scmp.eq.s32.totalorder %s1531_s28, 1 }
  0x3b   : > { %s1600_s17 = scalar_select %p30_p4, %s1455_s26, %s32_s12  }
  0x3c   : > { %p41_p5 = por %p40_p12, %p39_p6  ;;  %p1604_p10 = por %p1759_p3, %p39_p6 }
  0x3d   : > { %s269_s21 = sand.u32 1, %s1455_s26   ;;  %s1156_s22 = smul.u32 384, %s1459_s27 }
  0x3e   : > { %s1760_s20 = scalar_select %p1604_p10, 1, 0 }
  0x3f   : > { %s1155_s16 = smul.u32 24, %s269_s21  ;;  %p1610_p11 = pnand %p1195_p0, %p41_p5 }
  0x40   : > { %s1617_s29 = scalar_lea.hbm %s1739_s0, %s1156_s22  ;;  %s270_s13 = scalar_lea.sflag [#allocation3], %s269_s21 }
  0x41   : > { %s273_s10 = scalar_lea.vmem [#allocation2], %s1155_s16  ;;  %s1359_s15 = scalar_lea.hbm %s1617_s29, 384 }
  0x42   : > { %s281_s11 = sshll.u32 %s273_s10, 4  ;;  %p1360_p7 = scmp.ne.s32.totalorder %s1617_s29, %s1359_s15  ;;  %s282_s11 = int_to_ptr.vmem [resolvable:$true] %s281_s11 }
  0x43   : > { %p1361_p1 = pneg %p1610_p11  ;;  %s1364_s19 = scalar_lea.hbm %s1739_s0, 768 }
  0x44   : > { %p1365_p2 = scmp.lt.s32.totalorder %s1617_s29, %s1739_s0  ;;  %p1366_p4 = scmp.lt.s32.totalorder %s1364_s19, %s1359_s15 }
  0x45   : > { %p1362_p9 = pnand %p1361_p1, %p1360_p7 }
  0x46   : > { %p1367_p6 = por %p1366_p4, %p1365_p2 }
  0x47   : > { %p1363_p13 = pneg %p1362_p9 }
  0x49   : > { %p1368_p12 = pnand %p1367_p6, %p1363_p13 }
  0x4b   : > { %1371 = shalt.err (!%p1368_p12)
}
  0x4c   : > { %s1372_s16 = scalar_lea.vmem %s282_s11, 384  ;;  %s1466_s21 = smov [#allocation2]  }
  0x4d   : > { %p1373_p0 = scmp.ne.s32.totalorder %s282_s11, %s1372_s16  ;;  %s1377_s10 = sshll.u32 %s1466_s21, 4  ;;  %s1378_s10 = int_to_ptr.vmem [resolvable:$false] %s1377_s10 }
  0x4e   : > { %s1379_s3 = scalar_lea.vmem %s1378_s10, 768  ;;  %p1380_p7 = scmp.lt.s32.totalorder %s282_s11, %s1378_s10 }
  0x4f   : > { %p1375_p5 = pnand %p1373_p0, %p1361_p1  ;;  %p1381_p9 = scmp.lt.s32.totalorder %s1379_s3, %s1372_s16 }
  0x51   : > { %p1376_p3 = pneg %p1375_p5  ;;  %p1382_p10 = por %p1381_p9, %p1380_p7 }
  0x53   : > { %p1383_p8 = pnand %p1382_p10, %p1376_p3 }
  0x55   : > { %1386 = shalt.err (!%p1383_p8)
}
  0x56   : > { %1187 = dma.hbm_to_vmem [thread:$0]  (!%p1610_p11), %s1617_s29, 384, %s282_s11, %s270_s13  }
  0x57   : > { %p1762_p13 = scmp.ne.s32.totalorder %s1755_s9, 0 }
  0x58   : > { %s1636_s1 = sand.u32 (!%p1762_p13), 1, %s1451_s25   ;;  %p1763_p1 = scmp.ne.s32.totalorder (!%p1762_p13), %s1753_s30, 0 }
  0x59   : > { %290 = sbr.rel (%p1762_p13) target bundleno = 1028 (0x404), region = 48  ;;  %s293_s12 = scalar_lea.sflag (!%p1762_p13), [#allocation3], %s1636_s1 }
  0x5a   : > { %s1157_s15 = smul.u32 (!%p1762_p13), 24, %s1636_s1 }
  0x5c   : > { %s296_s19 = scalar_lea.vmem (!%p1762_p13), [#allocation2], %s1157_s15 }
  0x5e   : > { %1430 = dma.done.wait (%p1763_p1), %s293_s12, 384  }
  0x5f   : > { %1432 = vsyncadd (%p1763_p1), %s293_s12, 4294966912  ;;  %p1764_p8 = scmp.eq.s32.totalorder %s1531_s28, 0 }
  0x61   : > { %1434 = dma.done.wait (%p1764_p8), [#allocation6], 4096   ;;  %p1765_p10 = pmov %p1764_p8 }
  0x62   : > { %p1766_p11 = pmov %p1764_p8 }
  0x63   : > { %1436 = vsyncadd (%p1765_p10), [#allocation6], 4294963200 }
  0x64   : > { %1438 = dma.done.wait (%p1766_p11), [#allocation9], 1024   ;;  %p1767_p2 = pmov %p1764_p8 }
  0x65   : > { %v340_v0 = vld [vmem:[%s296_s19] sm:$0xff]  ;;  %v341_v1 = vld [vmem:[%s296_s19 + $0x8] sm:$0xff]  ;;  %v342_v2 = vld [vmem:[%s296_s19 + $0x10] sm:$0xff]  ;;  %v1467_v8 = vmov 0.0   ;;  %vm1468_vm0 = vmmov 0   ;;  %s998_s29 = sshll.u32 %s1636_s1, 3 }
  0x66   : > { %1440 = vsyncadd (%p1767_p2), [#allocation9], 4294966272  ;;  %v343_v3 = vadd.f32 %v341_v1, %v340_v0  ;;  %v1239_v5 = vld [vmem:[#allocation5 + $0x78] sm:$0xff]   ;;  %1095 = vmatprep.subr.bf16.mxu1 %v1467_v8  ;;  %v1242_v9 = vld [vmem:[#allocation5 + $0x70] sm:$0xff]   ;;  %1111 = vmatprep.mubr.msk.bf16.mxu1 %vm1468_vm0, %v1467_v8  ;;  %s1043_s23 = sshll.u32 %s1531_s28, 7  ;;  %s338_s22 = scalar_lea.vmem [#allocation10], %s998_s29 }
  0x67   : > { %v1240_v6 = vld [vmem:[#allocation5 + $0xb8] sm:$0xff]   ;;  %v1243_v10 = vld [vmem:[#allocation5 + $0xb0] sm:$0xff]   ;;  %1046 = vmatprep.subr.bf16.mxu0 %v1239_v5  ;;  %v1245_v12 = vld [vmem:[#allocation5 + $0x68] sm:$0xff]   ;;  %s888_s16 = sshll.u32 %s338_s22, 4  ;;  %s1696_s15 = scalar_lea.hbm %s1746_s7, %s1043_s23  ;;  %s1698_s16 = int_to_ptr.vmem [resolvable:$true] %s888_s16 }
  0x68   : > { %v344_v4 = vadd.f32 %v343_v3, %v342_v2  ;;  %v1241_v7 = vld [vmem:[#allocation5 + $0x38] sm:$0xff]   ;;  %1096 = vmatpush3.bf16.msra.mxu1 %v1240_v6  ;;  %v1244_v11 = vld [vmem:[#allocation5 + $0x30] sm:$0xff]   ;;  %v1246_v13 = vld [vmem:[#allocation5 + $0xa8] sm:$0xff]   ;;  %s875_s12 = scalar_lea.sflag [#allocation4], %s1636_s1  ;;  %s1387_s19 = scalar_lea.vmem %s1698_s16, 128 }
  0x69   : > { %1047 = vmatpush3.bf16.msra.mxu0 %v1241_v7  ;;  %1097 = vmatprep.subr.bf16.mxu1 %v1467_v8  ;;  %v1247_v24 = vld [vmem:[#allocation5 + $0x28] sm:$0xff]   ;;  %v1248_v25 = vld [vmem:[#allocation5 + $0x60] sm:$0xff]   ;;  %v1251_v28 = vld [vmem:[#allocation5 + $0x58] sm:$0xff]   ;;  %p1388_p4 = scmp.ne.s32.totalorder %s1698_s16, %s1387_s19  ;;  %p1768_p6 = scmp.ne.s32.totalorder %s1760_s20, 0 }
  0x6a   : > { %345 = vadd.xlane.f32.xlu0 %v344_v4  ;;  %1048 = vmatprep.subr.bf16.mxu0 %v1242_v9  ;;  %v1249_v26 = vld [vmem:[#allocation5 + $0xa0] sm:$0xff]   ;;  %v1252_v29 = vld [vmem:[#allocation5 + $0x98] sm:$0xff]   ;;  %v1254_v31 = vld [vmem:[#allocation5 + $0x50] sm:$0xff]   ;;  %s1469_s28 = smov [#allocation10]  }
  0x6b   : > { %v1250_v27 = vld [vmem:[#allocation5 + $0x20] sm:$0xff]   ;;  %v1253_v30 = vld [vmem:[#allocation5 + $0x18] sm:$0xff]   ;;  %v1255_v32 = vld [vmem:[#allocation5 + $0x90] sm:$0xff]   ;;  %p1389_p12 = pnand %p1388_p4, %p1768_p6  ;;  %s1391_s3 = sshll.u32 %s1469_s28, 4  ;;  %s1392_s3 = int_to_ptr.vmem [resolvable:$false] %s1391_s3 }
  0x6c   : > { %1098 = vmatpush3.bf16.msra.mxu1 %v1243_v10  ;;  %v1256_v33 = vld [vmem:[#allocation5 + $0x10] sm:$0xff]   ;;  %v1257_v34 = vld [vmem:[#allocation5 + $0x48] sm:$0xff]   ;;  %v1260_v37 = vld [vmem:[#allocation5 + $0x40] sm:$0xff]   ;;  %s1393_s30 = scalar_lea.vmem %s1392_s3, 256  ;;  %p1394_p5 = scmp.lt.s32.totalorder %s1698_s16, %s1392_s3 }
  0x6d   : > { %1049 = vmatpush3.bf16.msra.mxu0 %v1244_v11  ;;  %1099 = vmatprep.subr.bf16.mxu1 %v1467_v8  ;;  %v1258_v35 = vld [vmem:[#allocation5 + $0x88] sm:$0xff]   ;;  %v1261_v38 = vld [vmem:[#allocation5 + $0x80] sm:$0xff]   ;;  %v1263_v50 = vld [vmem:[#allocation7 + $0x38] sm:$0xff]   ;;  %p1390_p0 = pneg %p1389_p12  ;;  %p1395_p3 = scmp.lt.s32.totalorder %s1393_s30, %s1387_s19 }
  0x6e   : > { %1050 = vmatprep.subr.bf16.mxu0 %v1245_v12  ;;  %v1259_v36 = vld [vmem:[#allocation5 + $0x8] sm:$0xff]   ;;  %v1262_v39 = vld [vmem:[#allocation5] sm:$0xff]   ;;  %v1264_v51 = vld [vmem:[#allocation7 + $0x30] sm:$0xff]  }
  0x6f   : > { %v1265_v52 = vld [vmem:[#allocation7 + $0x28] sm:$0xff]   ;;  %v1266_v53 = vld [vmem:[#allocation7 + $0x20] sm:$0xff]   ;;  %v1267_v54 = vld [vmem:[#allocation7 + $0x18] sm:$0xff]   ;;  %p1396_p7 = por %p1395_p3, %p1394_p5 }
  0x70   : > { %1100 = vmatpush3.bf16.msra.mxu1 %v1246_v13  ;;  %v1268_v55 = vld [vmem:[#allocation7 + $0x10] sm:$0xff]   ;;  %v1269_v56 = vld [vmem:[#allocation7 + $0x8] sm:$0xff]   ;;  %v1270_v57 = vld [vmem:[#allocation7] sm:$0xff]  }
  0x71   : > { %1101 = vmatprep.subr.bf16.mxu1 %v1467_v8  ;;  %1051 = vmatpush3.bf16.msra.mxu0 %v1247_v24  ;;  %v1271_v58 = vld [vmem:[#allocation8 + $0x38] sm:$0xff]   ;;  %v1272_v59 = vld [vmem:[#allocation8 + $0x30] sm:$0xff]   ;;  %v1273_v60 = vld [vmem:[#allocation8 + $0x28] sm:$0xff]   ;;  %p1397_p9 = pnand %p1396_p7, %p1390_p0 }
  0x72   : > { %1052 = vmatprep.subr.bf16.mxu0 %v1248_v25  ;;  %v1274_v61 = vld [vmem:[#allocation8 + $0x20] sm:$0xff]   ;;  %v1275_v62 = vld [vmem:[#allocation8 + $0x18] sm:$0xff]   ;;  %v1276_v63 = vld [vmem:[#allocation8 + $0x10] sm:$0xff]  }
  0x73   : > { %v999_v3 = vld [vmem:[%s1741_s2] ss:$0 sm:$0xff] }
  0x74   : > { %1102 = vmatpush3.bf16.msra.mxu1 %v1249_v26 }
  0x75   : > { %1053 = vmatpush3.bf16.msra.mxu0 %v1250_v27  ;;  %1103 = vmatprep.subr.bf16.mxu1 %v1467_v8 }
  0x76   : > { %1054 = vmatprep.subr.bf16.mxu0 %v1251_v28 }
  0x78   : > { %1104 = vmatpush3.bf16.msra.mxu1 %v1252_v29 }
  0x79   : > { %1055 = vmatpush3.bf16.msra.mxu0 %v1253_v30  ;;  %1105 = vmatprep.subr.bf16.mxu1 %v1467_v8 }
  0x7a   : > { %1056 = vmatprep.subr.bf16.mxu0 %v1254_v31 }
  0x7c   : > { %1106 = vmatpush3.bf16.msra.mxu1 %v1255_v32 }
  0x7d   : > { %1057 = vmatpush3.bf16.msra.mxu0 %v1256_v33  ;;  %1107 = vmatprep.subr.bf16.mxu1 %v1467_v8 }
  0x7e   : > { %1058 = vmatprep.subr.bf16.mxu0 %v1257_v34 }
  0x80   : > { %1108 = vmatpush3.bf16.msra.mxu1 %v1258_v35 }
  0x81   : > { %1059 = vmatpush3.bf16.msra.mxu0 %v1259_v36  ;;  %1109 = vmatprep.subr.bf16.mxu1 %v1467_v8 }
  0x82   : > { %1060 = vmatprep.subr.bf16.mxu0 %v1260_v37 }
  0x84   : > { %1110 = vmatpush3.bf16.msra.mxu1 %v1261_v38 }
  0x85   : > { %1061 = vmatpush3.bf16.msra.mxu0 %v1262_v39  ;;  %1135 = vmatprep.subr.bf16.mxu1 %v1467_v8 }
  0x86   : > { %1115 = vmatprep.subr.bf16.mxu0 %v1467_v8 }
  0xf3   : > { %v346_v14 = vpop.xlane.xlu0 %345 }
  0xf4   : > { %v348_v15 = vmul.f32 0.0026041667, %v346_v14 }
  0xf6   : > { %v349_v16 = vsub.f32 %v340_v0, %v348_v15  ;;  %v350_v17 = vsub.f32 %v341_v1, %v348_v15  ;;  %v351_v18 = vsub.f32 %v342_v2, %v348_v15  ;;  %v1277_v15 = vld [vmem:[#allocation8 + $0x8] sm:$0xff]  }
  0xf8   : > { %v352_v19 = vmul.f32 %v349_v16, %v349_v16  ;;  %v353_v20 = vmul.f32 %v350_v17, %v350_v17  ;;  %v354_v21 = vmul.f32 %v351_v18, %v351_v18 }
  0xfa   : > { %v355_v22 = vadd.f32 %v353_v20, %v352_v19 }
  0xfc   : > { %v356_v23 = vadd.f32 %v355_v22, %v354_v21 }
  0xfe   : > { %357 = vadd.xlane.f32.xlu0 %v356_v23 }
 0x187   : > { %v358_v40 = vpop.xlane.xlu0 %357 }
 0x188   : > { %v359_v41 = vmul.f32 0.0026041667, %v358_v40 }
 0x18a   : > { %v360_v42 = vadd.f32 1e-05, %v359_v41 }
 0x18c   : > { %1279 = vrsqrt.f32 %v360_v42 }
 0x199   : > { %v1280_v43 = vpop.eup %1279 }
 0x19a   : > { %v363_v44 = vmul.f32 %v1280_v43, %v350_v17  ;;  %v364_v45 = vmul.f32 %v1280_v43, %v351_v18  ;;  %v362_v46 = vmul.f32 %v1280_v43, %v349_v16  ;;  %v1278_v16 = vld [vmem:[#allocation8] sm:$0xff]   ;;  %v1024_v17 = vld [vmem:[%s1743_s4] ss:$0 sm:$0xff] }
 0x19c   : > { %v366_v47 = vpack.c.bf16 %v363_v44, %v363_v44  ;;  %v367_v48 = vpack.c.bf16 %v364_v45, %v364_v45  ;;  %v365_v49 = vpack.c.bf16 %v362_v46, %v362_v46 }
 0x19e   : > { %599 = vmatprep.mubr.bf16.mxu0 %v366_v47  ;;  %1112 = vmatmul.mubr.bf16.vlgmr.msra.gmra.mxu1 %v367_v48 }
 0x19f   : > { %600 = vmatmul.mubr.bf16.vlgmr.msra.gmra.mxu0 %v365_v49  ;;  %1151 = vmatprep.mubr.msk.bf16.mxu1 %vm1468_vm0, %v1467_v8 }
 0x1a0   : > { %1116 = vmatpush3.bf16.msra.mxu0 %v1263_v50  ;;  %1131 = vmatprep.mubr.msk.bf16.mxu0 %vm1468_vm0, %v1467_v8 }
 0x1a1   : > { %1117 = vmatprep.subr.bf16.mxu0 %v1467_v8  ;;  %1136 = vmatpush3.bf16.msra.mxu1 %v1271_v58 }
 0x1a2   : > { %1137 = vmatprep.subr.bf16.mxu1 %v1467_v8 }
 0x1a4   : > { %1118 = vmatpush3.bf16.msra.mxu0 %v1264_v51 }
 0x1a5   : > { %1119 = vmatprep.subr.bf16.mxu0 %v1467_v8  ;;  %1138 = vmatpush3.bf16.msra.mxu1 %v1272_v59 }
 0x1a6   : > { %1139 = vmatprep.subr.bf16.mxu1 %v1467_v8 }
 0x1a8   : > { %1120 = vmatpush3.bf16.msra.mxu0 %v1265_v52 }
 0x1a9   : > { %1121 = vmatprep.subr.bf16.mxu0 %v1467_v8  ;;  %1140 = vmatpush3.bf16.msra.mxu1 %v1273_v60 }
 0x1aa   : > { %1141 = vmatprep.subr.bf16.mxu1 %v1467_v8 }
 0x1ac   : > { %1122 = vmatpush3.bf16.msra.mxu0 %v1266_v53 }
 0x1ad   : > { %1123 = vmatprep.subr.bf16.mxu0 %v1467_v8  ;;  %1142 = vmatpush3.bf16.msra.mxu1 %v1274_v61 }
 0x1ae   : > { %1143 = vmatprep.subr.bf16.mxu1 %v1467_v8 }
 0x1b0   : > { %1124 = vmatpush3.bf16.msra.mxu0 %v1267_v54 }
 0x1b1   : > { %1125 = vmatprep.subr.bf16.mxu0 %v1467_v8  ;;  %1144 = vmatpush3.bf16.msra.mxu1 %v1275_v62 }
 0x1b2   : > { %1145 = vmatprep.subr.bf16.mxu1 %v1467_v8 }
 0x1b4   : > { %1126 = vmatpush3.bf16.msra.mxu0 %v1268_v55 }
 0x1b5   : > { %1127 = vmatprep.subr.bf16.mxu0 %v1467_v8  ;;  %1146 = vmatpush3.bf16.msra.mxu1 %v1276_v63 }
 0x1b6   : > { %1147 = vmatprep.subr.bf16.mxu1 %v1467_v8 }
 0x1b8   : > { %1128 = vmatpush3.bf16.msra.mxu0 %v1269_v56 }
 0x1b9   : > { %1129 = vmatprep.subr.bf16.mxu0 %v1467_v8  ;;  %1148 = vmatpush3.bf16.msra.mxu1 %v1277_v15 }
 0x1ba   : > { %1149 = vmatprep.subr.bf16.mxu1 %v1467_v8  ;;  %v1033_v8 = vld [vmem:[%s1745_s6] ss:$0 sm:$0xff] }
 0x1bc   : > { %1130 = vmatpush3.bf16.msra.mxu0 %v1270_v57 }
 0x1bd   : > { %1150 = vmatpush3.bf16.msra.mxu1 %v1278_v16 }
 0x25e   : > { %v641_v0 = vpop.f32.mrf.mxu1 }
 0x25f   : > { %v1062_v1 = vpop.f32.mrf.mxu0 }
 0x260   : > { %v1113_v2 = vpop.f32.mrf.mxu1 }
 0x261   : > { %v1063_v4 = vpop.f32.mrf.mxu0 }
 0x262   : > { %v1064_v5 = vadd.f32 %v1063_v4, %v1062_v1  ;;  %v644_v6 = vpop.f32.mrf.mxu1 }
 0x263   : > { %v1065_v7 = vpop.f32.mrf.mxu0 }
 0x264   : > { %v602_v9 = vadd.f32 %v1064_v5, %v999_v3  ;;  %v1114_v10 = vpop.f32.mrf.mxu1 }
 0x265   : > { %v1066_v11 = vpop.f32.mrf.mxu0 }
 0x266   : > { %v642_v12 = vadd.f32 %v641_v0, %v602_v9 }
 0x268   : > { %v647_v13 = vmax.f32 %v642_v12, 0.0 }
 0x26a   : > { %v648_v14 = vpack.c.bf16 %v647_v13, %v647_v13 }
 0x26c   : > { %1132 = vmatmul.mubr.bf16.vlgmr.msra.gmra.mxu0 %v648_v14 }
 0x32c   : > { %v754_v18 = vpop.f32.mrf.mxu0 }
 0x32d   : > { %v755_v19 = vadd.f32 %v1024_v17, %v754_v18 }
 0x32e   : > { %v1133_v20 = vpop.f32.mrf.mxu0 }
 0x32f   : > { %v760_v21 = vmax.f32 %v755_v19, 0.0 }
 0x330   : > { %v757_v22 = vpop.f32.mrf.mxu0 }
 0x331   : > { %v761_v23 = vpack.c.bf16 %v760_v21, %v760_v21 }
 0x332   : > { %v1134_v24 = vpop.f32.mrf.mxu0 }
 0x333   : > { %1152 = vmatmul.mubr.bf16.vlgmr.msra.gmra.mxu1 %v761_v23 }
 0x3f3   : > { %v867_v25 = vpop.f32.mrf.mxu1 }
 0x3f4   : > { %v868_v26 = vadd.f32 %v1033_v8, %v867_v25 }
 0x3f5   : > { %v1153_v27 = vpop.f32.mrf.mxu1 }
 0x3f6   : > { %873 = vst [vmem:[%s338_s22] sm:$0xff] %v868_v26 }
 0x3f7   : > { %v870_v28 = vpop.f32.mrf.mxu1 }
 0x3f8   : > { %1400 = shalt.err (!%p1397_p9)
}
 0x3f9   : > { %s1401_s9 = scalar_lea.hbm %s1696_s15, 128  ;;  %s1405_s29 = scalar_lea.hbm %s1746_s7, 256 }
 0x3fa   : > { %p1402_p13 = scmp.ne.s32.totalorder %s1696_s15, %s1401_s9  ;;  %p1406_p10 = scmp.lt.s32.totalorder %s1696_s15, %s1746_s7 }
 0x3fb   : > { %p1407_p11 = scmp.lt.s32.totalorder %s1405_s29, %s1401_s9 }
 0x3fc   : > { %p1403_p1 = pnand %p1402_p13, %p1768_p6 }
 0x3fd   : > { %p1408_p2 = por %p1407_p11, %p1406_p10 }
 0x3fe   : > { %p1404_p8 = pneg %p1403_p1 }
 0x400   : > { %p1409_p4 = pnand %p1408_p2, %p1404_p8 }
 0x402   : > { %1412 = shalt.err (!%p1409_p4)
}
 0x403   : > { %1172 = dma.vmem_to_hbm [thread:$0]  (%p1768_p6), %s1698_s16, 128, %s1696_s15, %s875_s12   ;;  %v1154_v29 = vpop.f32.mrf.mxu1 }
 0x404 PF: > { %s900_s23 = sand.u32 1, %s1447_s24   ;;  %p1769_p12 = scmp.ne.s32.totalorder %s1754_s8, 0 }
 0x405   : > { %p1770_p0 = scmp.ge.s32.totalorder %s1459_s27, 2  ;;  %s901_s22 = scalar_lea.sflag [#allocation4], %s900_s23 }
 0x407   : > { %p1189_p5 = pnand %p1770_p0, %p1769_p12 }
 0x409   : > { %p1190_p3 = pneg %p1189_p5 }
 0x40b   : > { %1442 = dma.done.wait (%p1190_p3), %s901_s22, 128  }
 0x40c   : > { %1444 = vsyncadd (%p1190_p3), %s901_s22, 4294967168  ;;  %p22_p7 = scmp.ge.s32.totalorder %s1590_s14, 4   ;;  %s1771_s24 = smov %s1451_s25 }
 0x40d   : > { %s1772_s25 = smov %s1455_s26  ;;  %s1773_s26 = smov %s1600_s17 }
 0x40e   : > { %s1774_s27 = smov %s1590_s14  ;;  %24 = sbr.rel (!%p22_p7) target bundleno = 10 (0xa), region = 105 }
 0x413   :  { %906 = vsyncpa [#allocation3], 1 }
 0x414   :  { %908 = vsyncpa [#allocation3 + $0x1], 1 }
 0x415   :  { %909 = vsyncpa [#allocation6], 1 }
 0x416   :  { %910 = vsyncpa [#allocation9], 1 }
 0x417   :  { %911 = vsyncpa [#allocation4], 1 }
 0x418   :  { %913 = vsyncpa [#allocation4 + $0x1], 1 }

</bundles_post_ra>
